<compile_context>
chip_gen: v7x
topology: tpu7x:2x2x1
jax: 0.10.0
libtpu: 0.0.40
codegen_flags: <defaults>
</compile_context>

<pallas_src>
import functools

import jax
import jax.numpy as jnp
from jax.experimental import pallas as pl
from jax.experimental.pallas import tpu as pltpu


def _reduced_focal_kernel(logit_ref, target_ref, out_ref, *, gamma, thresh, hw, ts):
    """One lane-dense (C, ts) tile -> partial (sum(mod*ce), sum(mod)) in (2,128)."""
    s = pl.program_id(1)

    x = logit_ref[0].astype(jnp.float32)            # (C, ts): classes on sublanes
    t = target_ref[0]                               # (1, ts) int32
    c = x.shape[0]

    # Numerically stable log-softmax statistics along the short class axis.
    m = jnp.max(x, axis=0, keepdims=True)           # (1, ts)  XLU sublane reduce
    shifted = x - m                                 # (C, ts)
    ex = jnp.exp(shifted)                           # (C, ts)  EUP
    sum_exp = jnp.sum(ex, axis=0, keepdims=True)    # (1, ts)  XLU sublane reduce

    # One-hot gather of the target class (no dynamic gather on TPU).
    cls = jax.lax.broadcasted_iota(jnp.int32, (c, ts), 0)
    shifted_t = jnp.sum(jnp.where(cls == t, shifted, 0.0), axis=0, keepdims=True)

    ce = jnp.log(sum_exp) - shifted_t               # (1, ts) = -log p_target
    # Cheap (1, ts) EUP exp instead of a fourth masked sublane reduction.
    p_t = jnp.exp(-ce)

    ratio = (1.0 - p_t) * (1.0 / thresh)
    g = float(gamma)
    if g.is_integer() and 1 <= int(g) <= 8:
        # Integer gamma (default 2.0): repeated VPU multiplies, keeps EUP free.
        mod_focal = ratio
        for _ in range(int(g) - 1):
            mod_focal = mod_focal * ratio
    else:
        mod_focal = ratio ** g
    # "Reduced" part: only easy examples (p_t >= thresh) get the focal factor.
    modulate = jnp.where(p_t < thresh, 1.0, mod_focal)      # (1, ts)

    # Tail mask: padded lanes (DMA past HW) contribute 0 to BOTH num and den.
    lane = jax.lax.broadcasted_iota(jnp.int32, (1, ts), 1)
    valid = (s * ts + lane) < hw                             # (1, ts)

    stacked = jnp.concatenate([modulate * ce, modulate], axis=0)   # (2, ts)
    stacked = jnp.where(valid, stacked, 0.0)
    partial = jnp.sum(stacked, axis=1, keepdims=True)              # (2, 1)
    out_ref[...] = partial * jnp.ones((1, 128), jnp.float32)       # (2, 128)


def reduced_softmax_focal_loss(logit_nchw, target_nhw, gamma=2.0, thresh=0.5):
    """Pallas implementation of ReducedSoftmaxFocalLoss.forward."""
    N, C, H, W = logit_nchw.shape
    HW = H * W

    # Zero-copy views: no transpose, no host-side widening (kernel widens to f32).
    x = logit_nchw.reshape(N, C, HW)
    t = target_nhw.reshape(N, 1, HW).astype(jnp.int32)

    itemsize = jnp.dtype(logit_nchw.dtype).itemsize

    # --- VMEM budget: total live footprint per grid step -----------------
    # double-buffered logits (HBM dtype) + double-buffered int32 targets
    # + ~6 f32 (C, ts) temporaries (widened x, shifted, ex, iota, selects).
    try:
        vmem_cap = int(pltpu.get_tpu_info().vmem_capacity_bytes)
    except Exception:
        vmem_cap = 64 << 20                       # v7x lower bound; safe everywhere
    budget_total = max(2 << 20, min(vmem_cap // 6, 12 << 20))

    per_lane_bytes = 2 * C * itemsize + 2 * 4 + 6 * C * 4
    cap_vmem = max(128, (budget_total // per_lane_bytes) // 128 * 128)

    # Keep >= ~8 grid steps so both v7x TensorCores (and the DMA pipeline) stay busy.
    tiles_per_sample = max(1, -(-8 // N))                       # ceil(8 / N)
    cap_parallel = max(128, (-(-HW // tiles_per_sample)) // 128 * 128)

    hw_padded = ((HW + 127) // 128) * 128
    ts = max(128, min(cap_vmem, cap_parallel, hw_padded))       # multiple of 128

    s_tiles = pl.cdiv(HW, ts)
    g_total = N * s_tiles

    kernel = functools.partial(_reduced_focal_kernel, gamma=float(gamma),
                               thresh=float(thresh), hw=HW, ts=ts)

    cost = pl.CostEstimate(
        flops=int(8 * N * C * HW),
        transcendentals=int(N * HW * (C + 2)),
        bytes_accessed=int(N * C * HW * itemsize + N * HW * 4
                           + g_total * 2 * 128 * 4),
    )

    out = pl.pallas_call(
        kernel,
        out_shape=jax.ShapeDtypeStruct((2, g_total * 128), jnp.float32),
        grid_spec=pltpu.PrefetchScalarGridSpec(
            num_scalar_prefetch=0,
            grid=(N, s_tiles),
            in_specs=[
                pl.BlockSpec((1, C, ts), lambda b, s: (b, 0, s)),   # logits tile
                pl.BlockSpec((1, 1, ts), lambda b, s: (b, 0, s)),   # targets tile
            ],
            out_specs=pl.BlockSpec((2, 128), lambda b, s: (0, b * s_tiles + s)),
        ),
        compiler_params=pltpu.CompilerParams(
            dimension_semantics=("parallel", "parallel"),   # stateless per-tile partials
            vmem_limit_bytes=int(min(vmem_cap // 2, 64 << 20)),
        ),
        cost_estimate=cost,
    )(x, t)

    # Tiny final reduction + divide in JAX: lane 0 of each tile holds the partial.
    parts = out.reshape(2, g_total, 128)[:, :, 0]
    return jnp.sum(parts[0]) / jnp.sum(parts[1])


def reduced_softmax_focal_loss_ref(logit_nchw, target_nhw, gamma=2.0, thresh=0.5):
    """Pure-JAX reference mirroring the PyTorch forward."""
    N, C, H, W = logit_nchw.shape
    x = jnp.transpose(logit_nchw, (0, 2, 3, 1)).reshape(-1, C).astype(jnp.float32)
    t = target_nhw.reshape(-1).astype(jnp.int32)
    logp = jax.nn.log_softmax(x, axis=-1)
    ce = -jnp.take_along_axis(logp, t[:, None], axis=-1)[:, 0]
    p_t = jnp.exp(-ce)
    modulate = (1.0 - p_t) ** gamma / (thresh ** gamma)
    modulate = jnp.where(p_t < thresh, 1.0, modulate)
    return jnp.sum(modulate * ce / jnp.sum(modulate))


if __name__ == "__main__":
    key = jax.random.PRNGKey(0)
    k_logit, k_target = jax.random.split(key)

    N, C, H, W = 2, 4, 16, 16
    logit = jax.random.normal(k_logit, (N, C, H, W), dtype=jnp.float32)
    target = jax.random.randint(k_target, (N, H, W), 0, C, dtype=jnp.int32)

    loss = reduced_softmax_focal_loss(logit, target, gamma=2.0, thresh=0.5)
    loss = jax.block_until_ready(loss)

    ref = reduced_softmax_focal_loss_ref(logit, target, gamma=2.0, thresh=0.5)
    assert jnp.allclose(loss, ref, rtol=1e-4, atol=1e-6), (loss, ref)

    print("KERNEL_OK")
</pallas_src>

<mosaic_0001>
module attributes {stable_mosaic.version = 11 : i64} {
  func.func @_reduced_focal_kernel(%arg0: i32, %arg1: i32, %arg2: memref<1x4x128xf32, #tpu.memory_space<vmem>>, %arg3: memref<1x1x128xi32, #tpu.memory_space<vmem>>, %arg4: memref<2x128xf32, #tpu.memory_space<vmem>>) attributes {dimension_semantics = [#tpu.dimension_semantics<parallel>, #tpu.dimension_semantics<parallel>], iteration_bounds = array<i64: 2, 2>, scalar_prefetch = 0 : i64, scratch_operands = 0 : i64, tpu.core_type = #tpu.core_type<tc>, window_params = [{transform_indices = @transform_0, window_bounds = array<i64: 1, 4, 128>}, {transform_indices = @transform_1, window_bounds = array<i64: 1, 1, 128>}, {transform_indices = @transform_2, window_bounds = array<i64: 2, 128>}]} {
    %c0 = arith.constant 0 : index
    %c0_0 = arith.constant 0 : index
    %c0_1 = arith.constant 0 : index
    %0 = vector.load %arg2[%c0, %c0_0, %c0_1] : memref<1x4x128xf32, #tpu.memory_space<vmem>>, vector<1x4x128xf32>
    %1 = vector.shape_cast %0 : vector<1x4x128xf32> to vector<4x128xf32>
    %c0_2 = arith.constant 0 : index
    %c0_3 = arith.constant 0 : index
    %c0_4 = arith.constant 0 : index
    %2 = vector.load %arg3[%c0_2, %c0_3, %c0_4] : memref<1x1x128xi32, #tpu.memory_space<vmem>>, vector<1x1x128xi32>
    %3 = vector.shape_cast %2 : vector<1x1x128xi32> to vector<1x128xi32>
    %cst = arith.constant dense<0xFF800000> : vector<128xf32>
    %4 = vector.multi_reduction <maximumf>, %1, %cst [0] : vector<4x128xf32> to vector<128xf32>
    %5 = vector.shape_cast %4 : vector<128xf32> to vector<1x128xf32>
    %6 = vector.broadcast %5 : vector<1x128xf32> to vector<4x128xf32>
    %7 = arith.subf %1, %6 : vector<4x128xf32>
    %8 = math.exp %7 : vector<4x128xf32>
    %cst_5 = arith.constant dense<0.000000e+00> : vector<128xf32>
    %9 = vector.multi_reduction <add>, %8, %cst_5 [0] : vector<4x128xf32> to vector<128xf32>
    %10 = vector.shape_cast %9 : vector<128xf32> to vector<1x128xf32>
    %11 = tpu.iota {dimensions = array<i32: 0>} : vector<4x128xi32>
    %12 = vector.broadcast %3 : vector<1x128xi32> to vector<4x128xi32>
    %13 = arith.cmpi eq, %11, %12 : vector<4x128xi32>
    %cst_6 = arith.constant 0.000000e+00 : f32
    %14 = vector.broadcast %cst_6 : f32 to vector<4x128xf32>
    %15 = arith.select %13, %7, %14 : vector<4x128xi1>, vector<4x128xf32>
    %cst_7 = arith.constant dense<0.000000e+00> : vector<128xf32>
    %16 = vector.multi_reduction <add>, %15, %cst_7 [0] : vector<4x128xf32> to vector<128xf32>
    %17 = vector.shape_cast %16 : vector<128xf32> to vector<1x128xf32>
    %18 = math.log %10 : vector<1x128xf32>
    %19 = arith.subf %18, %17 : vector<1x128xf32>
    %cst_8 = arith.constant 0.000000e+00 : f32
    %20 = vector.broadcast %cst_8 : f32 to vector<1x128xf32>
    %21 = arith.subf %20, %19 : vector<1x128xf32>
    %22 = math.exp %21 : vector<1x128xf32>
    %cst_9 = arith.constant 1.000000e+00 : f32
    %23 = vector.broadcast %cst_9 : f32 to vector<1x128xf32>
    %24 = arith.subf %23, %22 : vector<1x128xf32>
    %cst_10 = arith.constant 2.000000e+00 : f32
    %25 = vector.broadcast %cst_10 : f32 to vector<1x128xf32>
    %26 = arith.mulf %24, %25 : vector<1x128xf32>
    %27 = arith.mulf %26, %26 : vector<1x128xf32>
    %cst_11 = arith.constant 5.000000e-01 : f32
    %28 = vector.broadcast %cst_11 : f32 to vector<1x128xf32>
    %29 = arith.cmpf olt, %22, %28 : vector<1x128xf32>
    %cst_12 = arith.constant 1.000000e+00 : f32
    %30 = vector.broadcast %cst_12 : f32 to vector<1x128xf32>
    %31 = arith.select %29, %30, %27 : vector<1x128xi1>, vector<1x128xf32>
    %32 = tpu.iota {dimensions = array<i32: 1>} : vector<1x128xi32>
    %c128_i32 = arith.constant 128 : i32
    %33 = arith.muli %arg1, %c128_i32 : i32
    %34 = vector.broadcast %33 : i32 to vector<1x128xi32>
    %35 = arith.addi %34, %32 : vector<1x128xi32>
    %c256_i32 = arith.constant 256 : i32
    %36 = vector.broadcast %c256_i32 : i32 to vector<1x128xi32>
    %37 = arith.cmpi slt, %35, %36 : vector<1x128xi32>
    %38 = arith.mulf %31, %19 : vector<1x128xf32>
    %39 = tpu.concatenate %38, %31 in 0 : vector<1x128xf32>, vector<1x128xf32> -> vector<2x128xf32>
    %cst_13 = arith.constant 0.000000e+00 : f32
    %40 = vector.shape_cast %37 : vector<1x128xi1> to vector<1x128xi1>
    %41 = vector.broadcast %40 : vector<1x128xi1> to vector<2x128xi1>
    %42 = vector.broadcast %cst_13 : f32 to vector<2x128xf32>
    %43 = arith.select %41, %39, %42 : vector<2x128xi1>, vector<2x128xf32>
    %cst_14 = arith.constant dense<0.000000e+00> : vector<2xf32>
    %44 = vector.multi_reduction <add>, %43, %cst_14 [1] : vector<2x128xf32> to vector<2xf32>
    %45 = vector.shape_cast %44 : vector<2xf32> to vector<2x1xf32>
    %cst_15 = arith.constant 1.000000e+00 : f32
    %46 = vector.broadcast %cst_15 : f32 to vector<1x128xf32>
    %47 = vector.broadcast %45 : vector<2x1xf32> to vector<2x128xf32>
    %48 = vector.broadcast %46 : vector<1x128xf32> to vector<2x128xf32>
    %49 = arith.mulf %47, %48 : vector<2x128xf32>
    %c0_16 = arith.constant 0 : index
    %c0_17 = arith.constant 0 : index
    %50 = vector.load %arg4[%c0_16, %c0_17] : memref<2x128xf32, #tpu.memory_space<vmem>>, vector<2x128xf32>
    tpu.vector_store %arg4[%c0_16, %c0_17], %49 {strides = array<i32>} : memref<2x128xf32, #tpu.memory_space<vmem>>, vector<2x128xf32>,
    return
  }
  func.func @transform_0(%arg0: i32, %arg1: i32) -> (i32, i32, i32) {
    %c0_i32 = arith.constant 0 : i32
    %c0_i32_0 = arith.constant 0 : i32
    return %arg0, %c0_i32, %arg1 : i32, i32, i32
  }
  func.func @transform_1(%arg0: i32, %arg1: i32) -> (i32, i32, i32) {
    %c0_i32 = arith.constant 0 : i32
    %c0_i32_0 = arith.constant 0 : i32
    return %arg0, %c0_i32, %arg1 : i32, i32, i32
  }
  func.func @transform_2(%arg0: i32, %arg1: i32) -> (i32, i32) {
    %c2_i32 = arith.constant 2 : i32
    %0 = arith.muli %arg0, %c2_i32 : i32
    %1 = arith.addi %0, %arg1 : i32
    %c0_i32 = arith.constant 0 : i32
    %c0_i32_0 = arith.constant 0 : i32
    return %c0_i32, %1 : i32, i32
  }
}

</mosaic_0001>

<bundles_post_ra>
// kernel: tpu_custom_call.1
= control target key start
LH: loop header
LB: loop body
LE: loop exit
PB: predicated region body
PF: predicated region fallthrough
CT: control target
= control target key end

     0   :  { %7 = vsyncpa [#allocation3], 0  ;;  %s1021_s0 = inlined_call_operand.hbm [shape: f32[2,4,256], index: 0, kind: input, shape index: {}]   ;;  %s1022_s1 = inlined_call_operand.hbm [shape: s32[2,1,256], index: 1, kind: input, shape index: {}]   ;;  %s1023_s2 = inlined_call_operand.hbm [shape: f32[2,512], index: 2, kind: output, shape index: {}]  }
   0x1   :  { %9 = vsyncpa [#allocation3 + $0x1], 0 }
   0x2   :  { %10 = vsyncpa [#allocation6], 0 }
   0x3   :  { %12 = vsyncpa [#allocation6 + $0x1], 0 }
   0x4   :  { %13 = vsyncpa [#allocation4], 0 }
   0x5   :  { %15 = vsyncpa [#allocation4 + $0x1], 0  ;;  %s745_s9 = smov 0   ;;  %s747_s10 = smov 0  }
   0x6   :  { %s749_s11 = smov 0   ;;  %s751_s12 = smov 0  }
   0x7   :  { %s753_s13 = smov 0   ;;  %s755_s14 = smov 0  }
   0x8   :  { %s757_s15 = smov 0   ;;  %s759_s16 = smov 0  }
   0x9   :  { %s761_s17 = smov 0   ;;  %s763_s18 = smov 0  }
   0xa   :  { %s765_s19 = smov 0  }
   0xb LB: > { %s405_s20 = sadd.s32 4294967295, %s725_s19   ;;  %s406_s21 = sadd.s32 4294967294, %s725_s19   ;;  %s725_s19 = sphi %s765_s19, %s21_s19   ;;  %s721_s18 = sphi %s763_s18, %s1053_s18   ;;  %s717_s17 = sphi %s761_s17, %s1052_s17   ;;  %s713_s16 = sphi %s759_s16, %s1051_s16   ;;  %s709_s15 = sphi %s757_s15, %s1050_s15   ;;  %s705_s14 = sphi %s755_s14, %s1049_s14   ;;  %s701_s13 = sphi %s753_s13, %s1048_s13   ;;  %s697_s12 = sphi %s751_s12, %s1047_s12   ;;  %s693_s11 = sphi %s749_s11, %s1046_s11   ;;  %s689_s10 = sphi %s747_s10, %s1045_s10   ;;  %s685_s9 = sphi %s745_s9, %s1044_s9  }
   0xc   : > { %s30_s22 = sadd.s32 1, %s717_s17  ;;  %s33_s23 = sadd.s32 1, %s721_s18 }
   0xd   : > { %p31_p0 = scmp.ge.s32.totalorder %s30_s22, 2  ;;  %s42_s24 = sadd.s32 1, %s705_s14 }
   0xe   : > { %p49_p1 = scmp.ne.s32.totalorder %s705_s14, %s701_s13  ;;  %p50_p2 = scmp.eq.s32.totalorder %s725_s19, 0 }
   0xf   : > { %s1055_s22 = smov (%p31_p0, %s30_s22), 0  ;;  %s1057_s23 = smov (!%p31_p0, %s33_s23), %s721_s18 }
  0x10   : > { %1028 = sst [smem:[#allocation11_spill]] %s1055_s22  ;;  %s38_s25 = ssub.s32 %s717_s17, %s1055_s22 }
  0x11   : > { %p811_p3 = por %p50_p2, %p49_p1  ;;  %p35_p4 = scmp.ge.s32.totalorder %s1057_s23, 2 }
  0x12   : > { %p55_p5 = scmp.ne.s32.totalorder %s701_s13, %s697_s12  ;;  %p56_p6 = scmp.eq.s32.totalorder %s405_s20, 0 }
  0x13   : > { %s407_s27 = sshll.u32 %s721_s18, 1  ;;  %s1059_s23 = smov (%p35_p4, %s1057_s23), 0 }
  0x14   : > { %1030 = sst [smem:[#allocation12_spill]] %s1059_s23  ;;  %p821_p7 = por %p56_p6, %p55_p5 }
  0x15   : > { %s826_s29 = sadd.s32 %s717_s17, %s407_s27  ;;  %s37_s30 = ssub.s32 %s721_s18, %s1059_s23 }
  0x16   : > { %s1031_s28 = scalar_select %p821_p7, 1, 0 }
  0x17   : > { %s408_s3 = sshll.u32 %s1059_s23, 1  ;;  %s39_s4 = sor.u32 %s38_s25, %s37_s30 }
  0x18   : > { %s96_s5 = sadd.s32 %s408_s3, %s1055_s22  ;;  %p40_p8 = scmp.eq.s32.totalorder %s39_s4, 0 }
  0x19   : > { %s97_s6 = ssub.s32 %s826_s29, %s96_s5  ;;  %s100_s7 = sadd.s32 1, %s693_s11 }
  0x1a   : > { %p98_p9 = scmp.eq.s32.totalorder %s97_s6, 0  ;;  %p110_p10 = scmp.ne.s32.totalorder %s693_s11, %s689_s10 }
  0x1b   : > { %s835_s8 = scalar_select %p40_p8, %s705_s14, %s42_s24  }
  0x1c   : > { %s838_s12 = scalar_select %p98_p9, %s693_s11, %s100_s7  }
  0x1d   : > { %p111_p11 = scmp.eq.s32.totalorder %s405_s20, 3  ;;  %p116_p12 = scmp.ne.s32.totalorder %s689_s10, %s685_s9 }
  0x1e   : > { %p117_p13 = scmp.eq.s32.totalorder %s406_s21, 3  ;;  %p443_p2 = scmp.lt.s32.totalorder %s725_s19, 4 }
  0x1f   : > { %p848_p0 = por %p111_p11, %p110_p10  ;;  %s858_s24 = sand.u32 1, %s705_s14  }
  0x20   : > { %p852_p1 = por %p117_p13, %p116_p12  ;;  %s413_s30 = sshll.u32 %s826_s29, 6 }
  0x21   : > { %s1032_s25 = scalar_select %p848_p0, 1, 0 }
  0x22   : > { %s1033_s27 = scalar_select %p852_p1, 1, 0 }
  0x23   : > { %s411_s3 = sshll.u32 %s858_s24, 2  ;;  %s865_s5 = scalar_lea.hbm %s1021_s0, %s413_s30 }
  0x24   : > { %s141_s21 = scalar_lea.vmem [#allocation2], %s411_s3  ;;  %p869_p4 = pnand %p443_p2, %p811_p3 }
  0x25   : > { %s150_s6 = sshll.u32 %s141_s21, 4  ;;  %s138_s4 = scalar_lea.sflag [#allocation3], %s858_s24  ;;  %s873_s6 = int_to_ptr.vmem [resolvable:$true] %s150_s6 }
  0x26   : > { %s539_s30 = scalar_lea.hbm %s865_s5, 64  ;;  %p541_p9 = pneg %p869_p4 }
  0x27   : > { %p540_p8 = scmp.ne.s32.totalorder %s865_s5, %s539_s30  ;;  %s544_s20 = scalar_lea.hbm %s1021_s0, 256 }
  0x28   : > { %p545_p3 = scmp.lt.u32.totalorder %s865_s5, %s1021_s0  ;;  %p546_p12 = scmp.lt.u32.totalorder %s544_s20, %s539_s30 }
  0x29   : > { %p542_p10 = pnand %p541_p9, %p540_p8  ;;  %p548_p2 = scmp.lt.u32.totalorder %s539_s30, %s865_s5 }
  0x2a   : > { %p547_p13 = por %p546_p12, %p545_p3 }
  0x2b   : > { %p543_p11 = pneg %p542_p10 }
  0x2c   : > { %p549_p5 = por %p548_p2, %p547_p13 }
  0x2e   : > { %p550_p6 = pnand %p549_p5, %p543_p11 }
  0x30   : > { %553 = shalt.err (!%p550_p6)
}
  0x31   : > { %s554_s22 = scalar_lea.vmem %s873_s6, 64  ;;  %s727_s26 = smov [#allocation2]  }
  0x32   : > { %p555_p8 = scmp.ne.s32.totalorder %s873_s6, %s554_s22  ;;  %s559_s3 = sshll.u32 %s727_s26, 4  ;;  %s560_s3 = int_to_ptr.vmem [resolvable:$false] %s559_s3 }
  0x33   : > { %s561_s23 = scalar_lea.vmem %s560_s3, 128  ;;  %p562_p0 = scmp.lt.s32.totalorder %s873_s6, %s560_s3 }
  0x34   : > { %p557_p10 = pnand %p555_p8, %p541_p9  ;;  %p563_p3 = scmp.lt.s32.totalorder %s561_s23, %s554_s22 }
  0x36   : > { %p558_p1 = pneg %p557_p10  ;;  %p564_p12 = por %p563_p3, %p562_p0 }
  0x38   : > { %p565_p13 = pnand %p564_p12, %p558_p1 }
  0x3a   : > { %568 = shalt.err (!%p565_p13)
}
  0x3b   : > { %435 = dma.hbm_to_vmem [thread:$0]  (!%p869_p4), %s865_s5, 64, %s873_s6, %s138_s4  }
  0x3c   : > { %p1035_p5 = scmp.lt.s32.totalorder %s725_s19, 5  ;;  %p1036_p6 = scmp.ge.s32.totalorder %s725_s19, 1 }
  0x3d   : > { %s415_s22 = sshll.u32 %s826_s29, 4  ;;  %s160_s3 = scalar_lea.vmem [#allocation5], %s858_s24 }
  0x3e   : > { %p907_p11 = pnand %p1036_p6, %p1035_p5  ;;  %s915_s26 = scalar_lea.hbm %s1022_s1, %s415_s22 }
  0x3f   : > { %s169_s23 = sshll.u32 %s160_s3, 4  ;;  %s158_s5 = scalar_lea.sflag [#allocation6], %s858_s24  ;;  %s170_s23 = int_to_ptr.vmem [resolvable:$true] %s169_s23 }
  0x40   : > { %s1037_s30 = scalar_select %p907_p11, 1, 0 }
  0x41   : > { %s569_s6 = scalar_lea.hbm %s915_s26, 16  ;;  %s574_s20 = scalar_lea.hbm %s1022_s1, 64 }
  0x42   : > { %p570_p0 = scmp.ne.s32.totalorder %s915_s26, %s569_s6  ;;  %p575_p8 = scmp.lt.u32.totalorder %s915_s26, %s1022_s1 }
  0x43   : > { %p576_p10 = scmp.lt.u32.totalorder %s574_s20, %s569_s6  ;;  %p578_p12 = scmp.lt.u32.totalorder %s569_s6, %s915_s26 }
  0x44   : > { %p572_p1 = pnand %p570_p0, %p541_p9 }
  0x45   : > { %p577_p3 = por %p576_p10, %p575_p8 }
  0x46   : > { %p573_p2 = pneg %p572_p1 }
  0x47   : > { %p579_p13 = por %p578_p12, %p577_p3 }
  0x49   : > { %p580_p5 = pnand %p579_p13, %p573_p2 }
  0x4b   : > { %583 = shalt.err (!%p580_p5)
}
  0x4c   : > { %s584_s24 = scalar_lea.vmem %s170_s23, 16  ;;  %s728_s3 = smov [#allocation5]  }
  0x4d   : > { %p585_p6 = scmp.ne.s32.totalorder %s170_s23, %s584_s24  ;;  %s589_s29 = sshll.u32 %s728_s3, 4  ;;  %s590_s29 = int_to_ptr.vmem [resolvable:$false] %s589_s29 }
  0x4e   : > { %s591_s4 = scalar_lea.vmem %s590_s29, 32  ;;  %p592_p7 = scmp.lt.s32.totalorder %s170_s23, %s590_s29 }
  0x4f   : > { %p587_p0 = pnand %p585_p6, %p541_p9  ;;  %p593_p11 = scmp.lt.s32.totalorder %s591_s4, %s584_s24 }
  0x51   : > { %p588_p1 = pneg %p587_p0  ;;  %p594_p8 = por %p593_p11, %p592_p7 }
  0x53   : > { %p595_p10 = pnand %p594_p8, %p588_p1 }
  0x55   : > { %598 = shalt.err (!%p595_p10)
}
  0x56   : > { %438 = dma.hbm_to_vmem [thread:$0]  (!%p869_p4), %s915_s26, 16, %s170_s23, %s158_s5  }
  0x57   : > { %p1038_p2 = scmp.ne.s32.totalorder %s1037_s30, 0 }
  0x58   : > { %s180_s6 = sand.u32 (!%p1038_p2), 1, %s701_s13   ;;  %p1039_p9 = scmp.ne.s32.totalorder (!%p1038_p2), %s1031_s28, 0 }
  0x59   : > { %178 = sbr.rel (%p1038_p2) target bundleno = 339 (0x153), region = 28  ;;  %s417_s20 = sshll.u32 (!%p1038_p2), %s180_s6, 2 }
  0x5a   : > { %s181_s22 = scalar_lea.sflag (!%p1038_p2), [#allocation3], %s180_s6  ;;  %s184_s21 = scalar_lea.vmem (!%p1038_p2), [#allocation2], %s417_s20 }
  0x60   : > { %672 = dma.done.wait (%p1039_p9), %s181_s22, 64  }
  0x61   : > { %674 = vsyncadd (%p1039_p9), %s181_s22, 4294967232  ;;  %s190_s24 = scalar_lea.sflag [#allocation6], %s180_s6  ;;  %s192_s3 = scalar_lea.vmem [#allocation5], %s180_s6 }
  0x62   : > { %676 = dma.done.wait (%p1039_p9), %s190_s24, 16  }
  0x63   : > { %678 = vsyncadd (%p1039_p9), %s190_s24, 4294967280  ;;  %vm221_vm0 = vcmask 1043456   ;;  %v219_v0 = vld [vmem:[%s184_s21] sm:$0xf]  ;;  %v239_v9 = vlaneseq  ;;  %s420_s28 = sshll.u32 %s709_s15, 7  ;;  %vm272_vm3 = vcmask 1040384  }
  0x64   : > { %v222_v1 = vsel %vm221_vm0, %v219_v0, -inf  ;;  %v419_v12 = vld [vmem:[%s192_s3] ss:$0 sm:$0xff]  ;;  %v268_v37 = vstv %s420_s28  ;;  %vm277_vm5 = vcmask 1041408   ;;  %s214_s7 = sand.u32 1, %s689_s10   ;;  %s422_s26 = sshll.u32 %s713_s16, 1 }
  0x65   : > { %v223_v2 = vrot.slane %v222_v1, 4  ;;  %v240_v11 = vshrl.u32 %v239_v9, 7  ;;  %v266_v35 = vand.u32 127, %v239_v9  ;;  %s418_s30 = sshll.u32 %s214_s7, 1  ;;  %s291_s23 = sadd.s32 %s709_s15, %s422_s26 }
  0x66   : > { %s216_s5 = scalar_lea.vmem [#allocation7], %s418_s30  ;;  %s423_s4 = sshll.u32 %s291_s23, 5 }
  0x67   : > { %v224_v3 = vmax.f32 %v222_v1, %v223_v2  ;;  %vm245_vm1 = vcmp.eq.s32.totalorder %v240_v11, %v419_v12  ;;  %v269_v39 = vadd.s32 %v268_v37, %v266_v35  ;;  %s298_s29 = sshll.u32 %s216_s5, 4  ;;  %s961_s22 = scalar_lea.hbm %s1023_s2, %s423_s4  ;;  %s956_s29 = int_to_ptr.vmem [resolvable:$true] %s298_s29 }
  0x68   : > { %s283_s21 = scalar_lea.sflag [#allocation4], %s214_s7  ;;  %s599_s24 = scalar_lea.vmem %s956_s29, 32 }
  0x69   : > { %v225_v4 = vrot.slane %v224_v3, 2  ;;  %vm270_vm4 = vcmp.lt.s32.totalorder %v269_v39, 256  ;;  %p600_p7 = scmp.ne.s32.totalorder %s956_s29, %s599_s24  ;;  %p1040_p4 = scmp.ne.s32.totalorder %s1032_s25, 0 }
  0x6a   : > { %s729_s15 = smov [#allocation7]  }
  0x6b   : > { %v226_v5 = vmax.f32 %v224_v3, %v225_v4  ;;  %p601_p11 = pnand %p600_p7, %p1040_p4  ;;  %s603_s16 = sshll.u32 %s729_s15, 4  ;;  %s604_s16 = int_to_ptr.vmem [resolvable:$false] %s603_s16 }
  0x6c   : > { %s605_s3 = scalar_lea.vmem %s604_s16, 64  ;;  %p606_p12 = scmp.lt.s32.totalorder %s956_s29, %s604_s16 }
  0x6d   : > { %v227_v6 = vrot.slane %v226_v5, 1  ;;  %p602_p3 = pneg %p601_p11  ;;  %p607_p13 = scmp.lt.s32.totalorder %s605_s3, %s599_s24 }
  0x6f   : > { %v228_v7 = vmax.f32 %v226_v5, %v227_v6  ;;  %p608_p5 = por %p607_p13, %p606_p12 }
  0x71   : > { %v229_v8 = vsub.f32 %v219_v0, %v228_v7  ;;  %p609_p6 = pnand %p608_p5, %p602_p3 }
  0x73   : > { %v230_v10 = vmul.f32 1.442695, %v229_v8  ;;  %v246_v13 = vsel %vm245_vm1, %v229_v8, 0.0 }
  0x74   : > { %v247_v15 = vsel %vm221_vm0, %v246_v13, 0.0 }
  0x75   : > { %533 = vpow2.f32 %v230_v10  ;;  %v248_v18 = vrot.slane %v247_v15, 4 }
  0x77   : > { %v249_v21 = vadd.f32 %v248_v18, %v247_v15 }
  0x79   : > { %v250_v24 = vrot.slane %v249_v21, 2 }
  0x7b   : > { %v251_v26 = vadd.f32 %v250_v24, %v249_v21 }
  0x7d   : > { %v252_v27 = vrot.slane %v251_v26, 1 }
  0x7f   : > { %v534_v14 = vpop.eup %533  ;;  %v253_v28 = vadd.f32 %v252_v27, %v251_v26 }
  0x80   : > { %v232_v16 = vsel %vm221_vm0, %v534_v14, 0.0 }
  0x81   : > { %v233_v17 = vrot.slane %v232_v16, 4 }
  0x83   : > { %v234_v19 = vadd.f32 %v233_v17, %v232_v16 }
  0x85   : > { %v235_v20 = vrot.slane %v234_v19, 2 }
  0x87   : > { %v236_v22 = vadd.f32 %v235_v20, %v234_v19 }
  0x89   : > { %v237_v23 = vrot.slane %v236_v22, 1 }
  0x8b   : > { %v238_v25 = vadd.f32 %v237_v23, %v236_v22 }
  0x8d   : > { %535 = vlog2.f32 %v238_v25 }
  0x97   : > { %v536_v29 = vpop.eup %535 }
  0x98   : > { %v255_v30 = vmul.f32 0.6931472, %v536_v29 }
  0x9a   : > { %v256_v31 = vsub.f32 %v255_v30, %v253_v28 }
  0x9c   : > { %v257_v32 = vsub.f32 0.0, %v256_v31 }
  0x9e   : > { %v258_v33 = vmul.f32 1.442695, %v257_v32 }
  0xa0   : > { %537 = vpow2.f32 %v258_v33 }
  0xaa   : > { %v538_v34 = vpop.eup %537 }
  0xab   : > { %v260_v36 = vsub.f32 1.0, %v538_v34  ;;  %vm263_vm2 = vcmp.lt.f32.partialorder %v538_v34, 0.5 }
  0xad   : > { %v261_v38 = vmul.f32 2.0, %v260_v36 }
  0xaf   : > { %v262_v40 = vmul.f32 %v261_v38, %v261_v38 }
  0xb1   : > { %v264_v41 = vsel %vm263_vm2, 1.0, %v262_v40 }
  0xb2   : > { %v271_v42 = vmul.f32 %v264_v41, %v256_v31 }
  0xb4   : > { %v273_v43 = vsel %vm272_vm3, %v271_v42, %v264_v41 }
  0xb5   : > { %v276_v44 = vsel %vm270_vm4, %v273_v43, 0.0 }
  0xb6   : > { %v278_v45 = vsel %vm277_vm5, %v276_v44, 0.0 }
  0xb7   : > { %279 = vadd.xlane.f32.xlu0 %v278_v45 }
 0x144   : > { %v280_v46 = vpop.xlane.xlu0 %279 }
 0x145   : > { %281 = vst [vmem:[%s216_s5] sm:$0x3] %v280_v46 }
 0x146   : > { %612 = shalt.err (!%p609_p6)
}
 0x147   : > { %s613_s28 = scalar_lea.hbm %s961_s22, 32  ;;  %s617_s26 = scalar_lea.hbm %s1023_s2, 128 }
 0x148   : > { %p614_p0 = scmp.ne.s32.totalorder %s961_s22, %s613_s28  ;;  %p618_p10 = scmp.lt.u32.totalorder %s961_s22, %s1023_s2 }
 0x149   : > { %p619_p2 = scmp.lt.u32.totalorder %s617_s26, %s613_s28  ;;  %p621_p7 = scmp.lt.u32.totalorder %s613_s28, %s961_s22 }
 0x14a   : > { %p615_p1 = pnand %p614_p0, %p1040_p4 }
 0x14b   : > { %p620_p9 = por %p619_p2, %p618_p10 }
 0x14c   : > { %p616_p8 = pneg %p615_p1 }
 0x14d   : > { %p622_p11 = por %p621_p7, %p620_p9 }
 0x14f   : > { %p623_p3 = pnand %p622_p11, %p616_p8 }
 0x151   : > { %626 = shalt.err (!%p623_p3)
}
 0x152   : > { %430 = dma.vmem_to_hbm [thread:$0]  (%p1040_p4), %s956_s29, 32, %s961_s22, %s283_s21  }
 0x153 PF: > { %p444_p12 = scmp.ge.s32.totalorder %s725_s19, 2  ;;  %s310_s4 = sand.u32 1, %s685_s9  }
 0x154   : > { %p1041_p13 = scmp.ne.s32.totalorder %s1033_s27, 0  ;;  %s311_s6 = scalar_lea.sflag [#allocation4], %s310_s4 }
 0x156   : > { %p440_p5 = pnand %p444_p12, %p1041_p13 }
 0x158   : > { %680 = dma.done.wait (!%p440_p5), %s311_s6, 32  }
 0x159   : > { %682 = vsyncadd (!%p440_p5), %s311_s6, 4294967264  ;;  %s21_s19 = sadd.s32 1, %s725_s19   ;;  %s1042_s25 = sld [smem:[#allocation11_spill]] }
 0x15a   : > { %p18_p6 = scmp.ge.s32.totalorder %s21_s19, 6   ;;  %s1043_s29 = sld [smem:[#allocation12_spill]] }
 0x15b   : > { %s1044_s9 = smov %s689_s10  ;;  %s1045_s10 = smov %s693_s11 }
 0x15c   : > { %s1046_s11 = smov %s838_s12  ;;  %s1047_s12 = smov %s701_s13 }
 0x15d   : > { %s1048_s13 = smov %s705_s14  ;;  %s1049_s14 = smov %s835_s8 }
 0x15e   : > { %s1050_s15 = smov %s717_s17  ;;  %s1051_s16 = smov %s721_s18 }
 0x15f   : > { %s1052_s17 = smov %s1042_s25  ;;  %20 = sbr.rel (!%p18_p6) target bundleno = 11 (0xb), region = 86 }
 0x160   : > { %s1053_s18 = smov %s1043_s29 }
 0x166   :  { %316 = vsyncpa [#allocation3], 1 }
 0x167   :  { %318 = vsyncpa [#allocation3 + $0x1], 1 }
 0x168   :  { %319 = vsyncpa [#allocation6], 1 }
 0x169   :  { %321 = vsyncpa [#allocation6 + $0x1], 1 }
 0x16a   :  { %322 = vsyncpa [#allocation4], 1 }
 0x16b   :  { %324 = vsyncpa [#allocation4 + $0x1], 1 }

</bundles_post_ra>
